<compile_context>
chip_gen: v5e
topology: v5e:2x2
jax: 0.10.0
libtpu: 0.0.40
codegen_flags: <defaults>
</compile_context>

<pallas_src>
import functools
import math

import numpy as np
import jax
import jax.numpy as jnp
from jax.experimental import pallas as pl
from jax.experimental.pallas import tpu as pltpu


# ----------------------------------------------------------------------------
# Host-side (numpy, float64) construction of the constants that the PyTorch
# module bakes in via sympy: spherical Bessel roots and normalizers.
# ----------------------------------------------------------------------------
def _sph_jn_np(l, x):
    """Spherical Bessel j_l(x) for x > 0 via upward recurrence (float64)."""
    x = np.asarray(x, dtype=np.float64)
    j0 = np.sin(x) / x
    if l == 0:
        return j0
    j1 = np.sin(x) / x**2 - np.cos(x) / x
    if l == 1:
        return j1
    jm1, jc = j0, j1
    for ll in range(2, l + 1):
        jn = (2.0 * ll - 1.0) / x * jc - jm1
        jm1, jc = jc, jn
    return jc


def _bisect(f, a, b, iters=200):
    fa = f(a)
    for _ in range(iters):
        m = 0.5 * (a + b)
        fm = f(m)
        if fa * fm <= 0.0:
            b = m
        else:
            a, fa = m, fm
    return 0.5 * (a + b)


def _jn_zeros(n, k):
    """First k positive roots of j_l for l = 0..n-1 (DimeNet Jn_zeros)."""
    zerosj = np.zeros((n, k), dtype=np.float64)
    zerosj[0] = np.arange(1, k + 1, dtype=np.float64) * np.pi
    points = np.arange(1, k + n, dtype=np.float64) * np.pi
    racines = np.zeros(k + n - 1, dtype=np.float64)
    for i in range(1, n):
        for j in range(k + n - 1 - i):
            racines[j] = _bisect(lambda x: float(_sph_jn_np(i, x)),
                                 points[j], points[j + 1])
        points = racines.copy()
        zerosj[i, :] = racines[:k]
    return zerosj


def _bessel_constants(num_spherical, num_radial):
    z = _jn_zeros(num_spherical, num_radial)            # (n, k) roots
    norm = np.zeros_like(z)
    for l in range(num_spherical):
        for j in range(num_radial):
            norm[l, j] = 1.0 / math.sqrt(0.5 * float(_sph_jn_np(l + 1, z[l, j])) ** 2)
    return z, norm


# ----------------------------------------------------------------------------
# Pass 1: per-EDGE radial basis.  E on the lane axis, basis index on sublanes.
#   out[l*k+j, e] = scale[l,j] * j_l(z[l,j] * dist[e] / cutoff)
# ----------------------------------------------------------------------------
def _rbf_kernel(d_ref, z_ref, scale_ref, out_ref, *, n, k, inv_cutoff):
    nk = n * k
    x = d_ref[...] * jnp.float32(inv_cutoff)             # (1, TE)
    z_col = z_ref[...]                                    # (nk, 1)

    # Batched radial argument; ONE sin / ONE cos / ONE reciprocal over the
    # full (nk, TE) slab (single EUP slot is the binding unit; now paid per
    # edge rather than per triplet).
    arg = z_col * x                                       # (nk, TE)
    sin_a = jnp.sin(arg)
    inv_a = 1.0 / arg                                     # exact recip (see header)

    # Degree membership per sublane row: row i holds degree l = i // k.
    row = jax.lax.broadcasted_iota(jnp.int32, (nk, 1), 0)

    # Upward spherical-Bessel recurrence, full width + per-degree row selects.
    # TODO(synk): float32 upward recurrence loses accuracy for small arg at
    # high degree (num_spherical >= 7 with tiny distances); add a small-x
    # series/clamp if production configs need it.
    j0 = sin_a * inv_a                                    # j_0 = sin(x)/x
    j_sel = j0
    if n > 1:
        cos_a = jnp.cos(arg)                              # skipped when n == 1
        j_prev, j_curr = j0, (j0 - cos_a) * inv_a         # j_1
        j_sel = jnp.where(row >= k, j_curr, j_sel)
        for l in range(2, n):
            j_next = jnp.float32(2 * l - 1) * inv_a * j_curr - j_prev
            j_sel = jnp.where(row >= l * k, j_next, j_sel)
            j_prev, j_curr = j_curr, j_next

    # scale already includes N[l,j] * sqrt((2l+1)/4pi); single lane-dense store.
    out_ref[...] = scale_ref[...] * j_sel                 # (nk, TE)


# ----------------------------------------------------------------------------
# Pass 2: per-TRIPLET Legendre factor and combine with the gathered rbf rows.
#   out[l*k+j, a] = rbf_g[l*k+j, a] * P_l(cos(angle[a]))
# ----------------------------------------------------------------------------
def _cbf_combine_kernel(rbf_ref, ang_ref, out_ref, *, n, k):
    nk = n * k
    t = jnp.cos(ang_ref[...])                             # (1, TA), one cos pass
    row = jax.lax.broadcasted_iota(jnp.int32, (nk, 1), 0)

    p_prev = jnp.ones_like(t)                             # P_0
    cbf = p_prev                                          # (1, TA) broadcasts if n == 1
    if n > 1:
        p_curr = t                                        # P_1
        cbf = jnp.where(row >= k, p_curr, cbf)            # -> (nk, TA)
        for l in range(2, n):
            # precomputed Python-float coefficients: multiplies, no vector div
            p_next = (jnp.float32((2.0 * l - 1.0) / l) * t * p_curr
                      - jnp.float32((l - 1.0) / l) * p_prev)
            cbf = jnp.where(row >= l * k, p_next, cbf)
            p_prev, p_curr = p_curr, p_next

    # Single lane-dense slab store.
    out_ref[...] = rbf_ref[...] * cbf                     # (nk, TA)


# ----------------------------------------------------------------------------
# Tile picking: lane-axis tiles, multiples of 128, >= 2 grid steps when the
# data allows (v7x megacore); single-TC chips just see fewer, larger tiles.
# ----------------------------------------------------------------------------
def _pick_tile(n_elems, tile_req, *, min_grid_steps=2):
    n128 = 128 * (-(-max(int(n_elems), 1) // 128))
    tile = max(128, 128 * (int(tile_req) // 128))
    if n128 >= min_grid_steps * 128:
        tile = min(tile, 128 * (n128 // (min_grid_steps * 128)))
    tile = max(128, min(tile, n128))
    n_pad = tile * (-(-max(int(n_elems), 1) // tile))
    return tile, n_pad


# ----------------------------------------------------------------------------
# Wrapper: Pallas implementation of angle_emb.forward(dist, angle, idx_kj).
# ----------------------------------------------------------------------------
def angle_emb_pallas(dist, angle, idx_kj, z, norm, *, num_spherical, num_radial,
                     cutoff=5.0, tile_e=1024, tile_a=1024,
                     lane_major_output=False):
    n, k = int(num_spherical), int(num_radial)
    nk = n * k
    E = int(dist.shape[0])
    A = int(angle.shape[0])

    # Host-side constant prep: fold sqrt((2l+1)/4pi) into the normalizers and
    # reshape both tables to (n*k, 1) columns that broadcast against the slab.
    pref = np.sqrt((2.0 * np.arange(n) + 1.0) / (4.0 * np.pi))
    scale_col = jnp.asarray(
        (np.asarray(norm, np.float64) * pref[:, None]).reshape(nk, 1), jnp.float32)
    z_col = jnp.asarray(np.asarray(z, np.float64).reshape(nk, 1), jnp.float32)

    compiler_params = pltpu.CompilerParams(
        dimension_semantics=("parallel",))    # megacore-shardable on v7x

    # ---------------- pass 1: per-edge rbf table (nk, E_pad) ----------------
    tE, e_pad = _pick_tile(E, tile_e)
    d_row = jnp.pad(jnp.asarray(dist, jnp.float32), (0, e_pad - E),
                    constant_values=1.0).reshape(1, e_pad)   # pad keeps arg != 0

    rbf_kernel = functools.partial(_rbf_kernel, n=n, k=k,
                                   inv_cutoff=1.0 / float(cutoff))
    rbf_t = pl.pallas_call(
        rbf_kernel,
        out_shape=jax.ShapeDtypeStruct((nk, e_pad), jnp.float32),
        grid_spec=pltpu.PrefetchScalarGridSpec(
            num_scalar_prefetch=0,
            grid=(e_pad // tE,),
            in_specs=[
                pl.BlockSpec((1, tE), lambda i: (0, i)),     # dist (lanes)
                pl.BlockSpec((nk, 1), lambda i: (0, 0)),     # bessel roots column
                pl.BlockSpec((nk, 1), lambda i: (0, 0)),     # folded normalizers
            ],
            out_specs=pl.BlockSpec((nk, tE), lambda i: (0, i)),
        ),
        compiler_params=compiler_params,
    )(d_row, z_col, scale_col)

    # ---------------- glue: gather per-triplet rbf rows (XLA) ---------------
    # TODO(synk): this gather along the lane axis could move in-kernel (scalar
    # prefetch / DMA gather) if it ever shows up in profiles; it is pure
    # memory-bound glue of the same order as the output traffic.
    idx = jnp.asarray(idx_kj, jnp.int32)
    rbf_g = jnp.take(rbf_t, idx, axis=1)                     # (nk, A)

    # ---------------- pass 2: Legendre + combine over triplets --------------
    tA, a_pad = _pick_tile(A, tile_a)
    rbf_g = jnp.pad(rbf_g, ((0, 0), (0, a_pad - A)))
    ang_row = jnp.pad(jnp.asarray(angle, jnp.float32),
                      (0, a_pad - A)).reshape(1, a_pad)

    cbf_kernel = functools.partial(_cbf_combine_kernel, n=n, k=k)
    out_t = pl.pallas_call(
        cbf_kernel,
        out_shape=jax.ShapeDtypeStruct((nk, a_pad), jnp.float32),
        grid_spec=pltpu.PrefetchScalarGridSpec(
            num_scalar_prefetch=0,
            grid=(a_pad // tA,),
            in_specs=[
                pl.BlockSpec((nk, tA), lambda i: (0, i)),    # gathered rbf rows
                pl.BlockSpec((1, tA), lambda i: (0, i)),     # angles (lanes)
            ],
            out_specs=pl.BlockSpec((nk, tA), lambda i: (0, i)),
        ),
        compiler_params=compiler_params,
    )(rbf_g, ang_row)

    if lane_major_output:
        return out_t[:, :A]                                  # (nk, A), no transpose
    # Layout plumbing back to the PyTorch output layout (A, n*k).
    return out_t[:, :A].T


# ----------------------------------------------------------------------------
# Pure-numpy reference (computed the "original" way: full rbf table then gather)
# ----------------------------------------------------------------------------
def _reference(dist, angle, idx_kj, z, norm, n, k, cutoff):
    d = dist.astype(np.float64) / cutoff
    rbf = np.zeros((d.shape[0], n * k), dtype=np.float64)
    for l in range(n):
        for j in range(k):
            rbf[:, l * k + j] = norm[l, j] * _sph_jn_np(l, z[l, j] * d)
    t = np.cos(angle.astype(np.float64))
    P = [np.ones_like(t), t]
    for l in range(2, max(n, 2)):
        P.append(((2.0 * l - 1.0) * t * P[l - 1] - (l - 1.0) * P[l - 2]) / l)
    cbf = np.stack([math.sqrt((2 * l + 1) / (4.0 * math.pi)) * P[l]
                    for l in range(n)], axis=1)
    out = rbf[idx_kj].reshape(-1, n, k) * cbf.reshape(-1, n, 1)
    return out.reshape(-1, n * k)


# ----------------------------------------------------------------------------
if __name__ == "__main__":
    NUM_SPHERICAL = 3
    NUM_RADIAL = 6
    CUTOFF = 5.0

    # deterministic "parameters" (derived constants, as in the PyTorch __init__)
    z_np, norm_np = _bessel_constants(NUM_SPHERICAL, NUM_RADIAL)

    # deterministic small inputs
    E, A = 32, 64
    key = jax.random.PRNGKey(0)
    k1, k2, k3 = jax.random.split(key, 3)
    dist = jax.random.uniform(k1, (E,), jnp.float32, minval=0.5, maxval=CUTOFF)
    angle = jax.random.uniform(k2, (A,), jnp.float32, minval=0.0, maxval=math.pi)
    idx_kj = jax.random.randint(k3, (A,), 0, E, dtype=jnp.int32)

    out = angle_emb_pallas(
        dist, angle, idx_kj, z_np, norm_np,
        num_spherical=NUM_SPHERICAL, num_radial=NUM_RADIAL, cutoff=CUTOFF)
    out = jax.block_until_ready(out)

    ref = _reference(np.asarray(dist), np.asarray(angle), np.asarray(idx_kj),
                     z_np, norm_np, NUM_SPHERICAL, NUM_RADIAL, CUTOFF)

    assert out.shape == (A, NUM_SPHERICAL * NUM_RADIAL)
    np.testing.assert_allclose(np.asarray(out), ref, rtol=2e-3, atol=2e-3)
    print("KERNEL_OK")
</pallas_src>

<mosaic_0001>
module attributes {stable_mosaic.version = 11 : i64} {
  func.func @_rbf_kernel(%arg0: i32, %arg1: memref<1x128xf32, #tpu.memory_space<vmem>>, %arg2: memref<18x1xf32, #tpu.memory_space<vmem>>, %arg3: memref<18x1xf32, #tpu.memory_space<vmem>>, %arg4: memref<18x128xf32, #tpu.memory_space<vmem>>) attributes {dimension_semantics = [#tpu.dimension_semantics<parallel>], iteration_bounds = array<i64: 1>, scalar_prefetch = 0 : i64, scratch_operands = 0 : i64, tpu.core_type = #tpu.core_type<tc>, window_params = [{transform_indices = @transform_0, window_bounds = array<i64: 1, 128>}, {pipeline_mode = #tpu.pipeline_mode<synchronous>, transform_indices = @transform_1, window_bounds = array<i64: 18, 1>}, {pipeline_mode = #tpu.pipeline_mode<synchronous>, transform_indices = @transform_2, window_bounds = array<i64: 18, 1>}, {transform_indices = @transform_3, window_bounds = array<i64: 18, 128>}]} {
    %c0 = arith.constant 0 : index
    %c0_0 = arith.constant 0 : index
    %0 = vector.load %arg1[%c0, %c0_0] : memref<1x128xf32, #tpu.memory_space<vmem>>, vector<1x128xf32>
    %cst = arith.constant 2.000000e-01 : f32
    %1 = vector.broadcast %cst : f32 to vector<1x128xf32>
    %2 = arith.mulf %0, %1 : vector<1x128xf32>
    %c0_1 = arith.constant 0 : index
    %c0_2 = arith.constant 0 : index
    %3 = vector.load %arg2[%c0_1, %c0_2] : memref<18x1xf32, #tpu.memory_space<vmem>>, vector<18x1xf32>
    %4 = vector.broadcast %3 : vector<18x1xf32> to vector<18x128xf32>
    %5 = vector.broadcast %2 : vector<1x128xf32> to vector<18x128xf32>
    %6 = arith.mulf %4, %5 : vector<18x128xf32>
    %7 = math.sin %6 : vector<18x128xf32>
    %cst_3 = arith.constant 1.000000e+00 : f32
    %8 = vector.broadcast %cst_3 : f32 to vector<18x128xf32>
    %9 = arith.divf %8, %6 : vector<18x128xf32>
    %10 = tpu.iota {dimensions = array<i32: 0>} : vector<18x1xi32>
    %11 = arith.mulf %7, %9 : vector<18x128xf32>
    %12 = math.cos %6 : vector<18x128xf32>
    %13 = arith.subf %11, %12 : vector<18x128xf32>
    %14 = arith.mulf %13, %9 : vector<18x128xf32>
    %c6_i32 = arith.constant 6 : i32
    %15 = vector.broadcast %c6_i32 : i32 to vector<18x1xi32>
    %16 = arith.cmpi sge, %10, %15 : vector<18x1xi32>
    %17 = vector.shape_cast %16 : vector<18x1xi1> to vector<18x1xi1>
    %18 = vector.broadcast %17 : vector<18x1xi1> to vector<18x128xi1>
    %19 = arith.select %18, %14, %11 : vector<18x128xi1>, vector<18x128xf32>
    %cst_4 = arith.constant 3.000000e+00 : f32
    %20 = vector.broadcast %cst_4 : f32 to vector<18x128xf32>
    %21 = arith.mulf %20, %9 : vector<18x128xf32>
    %22 = arith.mulf %21, %14 : vector<18x128xf32>
    %23 = arith.subf %22, %11 : vector<18x128xf32>
    %c12_i32 = arith.constant 12 : i32
    %24 = vector.broadcast %c12_i32 : i32 to vector<18x1xi32>
    %25 = arith.cmpi sge, %10, %24 : vector<18x1xi32>
    %26 = vector.shape_cast %25 : vector<18x1xi1> to vector<18x1xi1>
    %27 = vector.broadcast %26 : vector<18x1xi1> to vector<18x128xi1>
    %28 = arith.select %27, %23, %19 : vector<18x128xi1>, vector<18x128xf32>
    %c0_5 = arith.constant 0 : index
    %c0_6 = arith.constant 0 : index
    %29 = vector.load %arg3[%c0_5, %c0_6] : memref<18x1xf32, #tpu.memory_space<vmem>>, vector<18x1xf32>
    %30 = vector.broadcast %29 : vector<18x1xf32> to vector<18x128xf32>
    %31 = arith.mulf %30, %28 : vector<18x128xf32>
    %c0_7 = arith.constant 0 : index
    %c0_8 = arith.constant 0 : index
    %32 = vector.load %arg4[%c0_7, %c0_8] : memref<18x128xf32, #tpu.memory_space<vmem>>, vector<18x128xf32>
    tpu.vector_store %arg4[%c0_7, %c0_8], %31 {strides = array<i32>} : memref<18x128xf32, #tpu.memory_space<vmem>>, vector<18x128xf32>,
    return
  }
  func.func @transform_0(%arg0: i32) -> (i32, i32) {
    %c0_i32 = arith.constant 0 : i32
    %c0_i32_0 = arith.constant 0 : i32
    return %c0_i32, %arg0 : i32, i32
  }
  func.func @transform_1(%arg0: i32) -> (i32, i32) {
    %c0_i32 = arith.constant 0 : i32
    %c0_i32_0 = arith.constant 0 : i32
    %c0_i32_1 = arith.constant 0 : i32
    return %c0_i32, %c0_i32_0 : i32, i32
  }
  func.func @transform_2(%arg0: i32) -> (i32, i32) {
    %c0_i32 = arith.constant 0 : i32
    %c0_i32_0 = arith.constant 0 : i32
    %c0_i32_1 = arith.constant 0 : i32
    return %c0_i32, %c0_i32_0 : i32, i32
  }
  func.func @transform_3(%arg0: i32) -> (i32, i32) {
    %c0_i32 = arith.constant 0 : i32
    %c0_i32_0 = arith.constant 0 : i32
    return %c0_i32, %arg0 : i32, i32
  }
}

</mosaic_0001>

<bundles_post_ra>
// kernel: tpu_custom_call.1
= control target key start
LH: loop header
LB: loop body
LE: loop exit
PB: predicated region body
PF: predicated region fallthrough
CT: control target
= control target key end

     0   :  { %v1164_v2 = vmov 0   ;;  %s1595_s0 = inlined_call_operand.vmem [shape: f32[1,128], index: 0, kind: input, shape index: {}]   ;;  %s1596_s1 = inlined_call_operand.vmem [shape: f32[18,1], index: 1, kind: input, shape index: {}]   ;;  %s1597_s2 = inlined_call_operand.vmem [shape: f32[18,1], index: 2, kind: input, shape index: {}]   ;;  %s1598_s3 = inlined_call_operand.hbm [shape: f32[18,128], index: 3, kind: output, shape index: {}]  }
   0x1   :  { %v18_v0 = vld [vmem:[%s1596_s1 + $0x8] sm:$0xff]  ;;  %v17_v1 = vld [vmem:[%s1596_s1] sm:$0xff]  ;;  %1130 = vset.pattern.permute.xlu1 %v1164_v2  ;;  %1129 = vset.pattern.permute.xlu0 %v1164_v2 }
   0x2   :  { %8 = vsyncpa [#allocation3], 0  ;;  %27 = vperm.xlu0 %1129, %v18_v0   ;;  %22 = vperm.xlu1 %1130, %v17_v1   ;;  %v19_v3 = vld [vmem:[%s1596_s1 + $0x10] sm:$0x3]  ;;  %v1059_v4 = vld [vmem:[%s1597_s2] sm:$0xff]  ;;  %s1089_s27 = sshll.u32 %s1598_s3, 4  ;;  %s1090_s27 = int_to_ptr.hbm [resolvable:$true] %s1089_s27 }
   0x3   :  { %1131 = vset.pattern.permute.xlu2 %v1164_v2  ;;  %v1060_v5 = vld [vmem:[%s1597_s2 + $0x8] sm:$0xff]  ;;  %v15_v6 = vld [vmem:[%s1595_s0] sm:$0x1]  ;;  %v1061_v9 = vld [vmem:[%s1597_s2 + $0x10] sm:$0x3]  ;;  %s1171_s0 = smov [#allocation2]  }
   0x4   :  { %1069 = vperm.xlu2 %1131, %v1060_v5   ;;  %v16_v7 = vmul.f32 0.2, %v15_v6  ;;  %v1165_v30 = vmov 683565275   ;;  %v1166_v32 = vmov 2475754826  }
   0x5   :  { %v1167_v35 = vmov 2131351028   ;;  %v1168_v37 = vmov 2102212464   ;;  %v1169_v39 = vmov 920167782  }
   0x6   :  { %v1215_v8 = vperm.slane %v16_v7, 0  ;;  %v1170_v47 = vmov 1326507024   ;;  %s1087_s2 = sshll.u32 %s1171_s0, 4  ;;  %s1172_s28 = smov 128   ;;  %s1088_s2 = int_to_ptr.vmem [resolvable:$true] %s1087_s2 }
   0x7   :  { %s1173_s29 = smov 8  }
   0xa   :  { %32 = vperm.xlu0 %1129, %v19_v3   ;;  %1064 = vperm.xlu1 %1130, %v1059_v4  }
   0xc   :  { %1074 = vperm.xlu2 %1131, %v1061_v9  }
  0x74   :  { %v28_v10 = vpop.permute.xlu0 %27  ;;  %v23_v11 = vpop.permute.xlu1 %22 }
  0x75   :  { %v1221_v12 = vmul.f32 %v1215_v8, %v28_v10  ;;  %v1224_v13 = vmul.f32 %v1215_v8, %v23_v11 }
  0x77   :  { %v199_v14 = vand.u32 2139095040, %v1221_v12  ;;  %v44_v15 = vand.u32 2139095040, %v1224_v13  ;;  %v1229_v18 = vand.u32 2147483647, %v1224_v13  ;;  %v1233_v27 = vand.u32 2147483647, %v1221_v12 }
  0x78   :  { %1132 = vrcp.f32 %v1224_v13 }
  0x79   :  { %v200_v16 = vshrl.u32 %v199_v14, 23  ;;  %v45_v17 = vshrl.u32 %v44_v15, 23  ;;  %v48_v23 = vand.u32 8388607, %v1229_v18  ;;  %v203_v44 = vand.u32 8388607, %v1233_v27 }
  0x7a   :  { %1134 = vrcp.f32 %v1221_v12 }
  0x7b   :  { %v1104_v19 = vadd.s32 4294967169, %v200_v16  ;;  %v1101_v20 = vadd.s32 4294967169, %v45_v17  ;;  %v49_v25 = vor.u32 8388608, %v48_v23  ;;  %v204_v56 = vor.u32 8388608, %v203_v44 }
  0x7c   :  { %v33_v61 = vpop.permute.xlu0 %32 }
  0x7d   :  { %v206_v21 = vadd.s32 1, %v1104_v19  ;;  %v51_v22 = vadd.s32 1, %v1101_v20  ;;  %v1244_v43 = vshll.u32 %v49_v25, 8  ;;  %v1275_v14 = vmul.f32 %v1215_v8, %v33_v61 }
  0x7e   :  { %v1279_v16 = vshll.u32 %v204_v56, 8 }
  0x7f   :  { %vm52_vm0 = vcmp.gt.s32.totalorder %v51_v22, 0  ;;  %vm207_vm1 = vcmp.gt.s32.totalorder %v206_v21, 0  ;;  %v90_v60 = vand.u32 65535, %v1244_v43  ;;  %v91_v1 = vshrl.u32 %v1244_v43, 16 }
  0x80   :  { %v53_v24 = vsel %vm52_vm0, %v51_v22, 0  ;;  %v208_v34 = vsel %vm207_vm1, %v206_v21, 0  ;;  %1136 = vrcp.f32 %v1275_v14 }
  0x81   :  { %v55_v26 = vand.u32 31, %v53_v24  ;;  %v1235_v28 = vshrl.u32 %v53_v24, 5  ;;  %v1251_v49 = vand.u32 31, %v208_v34  ;;  %v1277_v15 = vshrl.u32 %v208_v34, 5 }
  0x83   :  { %v56_v29 = vsub.s32 32, %v55_v26  ;;  %v58_v31 = vshll.u32 %v1165_v30, %v55_v26  ;;  %v61_v33 = vshll.u32 %v1166_v32, %v55_v26  ;;  %v64_v36 = vshll.u32 %v1167_v35, %v55_v26 }
  0x84   :  { %v67_v38 = vshll.u32 %v1168_v37, %v55_v26  ;;  %v70_v40 = vshll.u32 %v1169_v39, %v55_v26  ;;  %vm73_vm2 = vcmp.lt.s32.totalorder %v1235_v28, 1  ;;  %vm75_vm3 = vcmp.lt.s32.totalorder %v1235_v28, 3 }
  0x85   :  { %v59_v41 = vshrl.u32 %v1166_v32, %v56_v29  ;;  %v62_v42 = vshrl.u32 %v1167_v35, %v56_v29  ;;  %v65_v45 = vshrl.u32 %v1168_v37, %v56_v29  ;;  %v68_v46 = vshrl.u32 %v1169_v39, %v56_v29 }
  0x86   :  { %v71_v48 = vshrl.u32 %v1170_v47, %v56_v29  ;;  %vm76_vm4 = vcmp.lt.s32.totalorder %v1235_v28, 4  ;;  %vm74_vm5 = vcmp.lt.s32.totalorder %v1235_v28, 2  ;;  %v57_v62 = vshrl.u32 %v1165_v30, %v56_v29 }
  0x87   :  { %v60_v50 = vor.u32 %v59_v41, %v58_v31  ;;  %v63_v51 = vor.u32 %v62_v42, %v61_v33  ;;  %v66_v52 = vor.u32 %v65_v45, %v64_v36  ;;  %v69_v53 = vor.u32 %v68_v46, %v67_v38 }
  0x88   :  { %v72_v54 = vor.u32 %v71_v48, %v70_v40  ;;  %v1272_v6 = vsub.s32 32, %v1251_v49  ;;  %v213_v24 = vshll.u32 %v1165_v30, %v1251_v49  ;;  %v222_v61 = vshll.u32 %v1168_v37, %v1251_v49 }
  0x89   :  { %v81_v55 = vsel %vm73_vm2, %v60_v50, %v63_v51  ;;  %v82_v57 = vsel %vm76_vm4, %v69_v53, 920167782  ;;  %v85_v58 = vsel %vm73_vm2, %v63_v51, %v66_v52  ;;  %v78_v3 = vsel %vm76_vm4, %v66_v52, 2102212464 }
  0x8a   :  { %v86_v59 = vsel %vm76_vm4, %v72_v54, 1326507024  ;;  %v83_v63 = vsel %vm75_vm3, %v66_v52, %v82_v57  ;;  %v77_v17 = vsel %vm73_vm2, %v57_v62, %v60_v50  ;;  %v79_v19 = vsel %vm75_vm3, %v63_v51, %v78_v3 }
  0x8b   :  { %v87_v0 = vsel %vm75_vm3, %v69_v53, %v86_v59  ;;  %v84_v4 = vsel %vm74_vm5, %v81_v55, %v83_v63  ;;  %v214_v8 = vshrl.u32 %v1166_v32, %v1272_v6  ;;  %v216_v54 = vshll.u32 %v1166_v32, %v1251_v49 }
  0x8c   :  { %v88_v5 = vsel %vm74_vm5, %v85_v58, %v87_v0  ;;  %v114_v10 = vand.u32 65535, %v84_v4  ;;  %v115_v11 = vshrl.u32 %v84_v4, 16  ;;  %v217_v57 = vshrl.u32 %v1167_v35, %v1272_v6 }
  0x8d   :  { %v92_v7 = vand.u32 65535, %v88_v5  ;;  %v93_v9 = vshrl.u32 %v88_v5, 16  ;;  %v1291_v51 = vor.u32 %v214_v8, %v213_v24  ;;  %v219_v58 = vshll.u32 %v1167_v35, %v1251_v49 }
  0x8e   :  { %v117_v22 = vmul.u32 %v115_v11, %v90_v60  ;;  %v118_v23 = vmul.u32 %v114_v10, %v91_v1  ;;  %v116_v31 = vmul.u32 %v114_v10, %v90_v60  ;;  %v119_v36 = vmul.u32 %v115_v11, %v91_v1 }
  0x8f   :  { %v95_v20 = vmul.u32 %v93_v9, %v90_v60  ;;  %v96_v21 = vmul.u32 %v92_v7, %v91_v1  ;;  %v94_v25 = vmul.u32 %v92_v7, %v90_v60  ;;  %v97_v26 = vmul.u32 %v93_v9, %v91_v1 }
  0x90   :  { %v120_v38 = vshll.u32 %v117_v22, 16  ;;  %v121_v42 = vshrl.u32 %v117_v22, 16  ;;  %v122_v45 = vshll.u32 %v118_v23, 16  ;;  %v220_v60 = vshrl.u32 %v1168_v37, %v1272_v6 }
  0x91   :  { %v98_v29 = vshll.u32 %v95_v20, 16  ;;  %v99_v33 = vshrl.u32 %v95_v20, 16  ;;  %v100_v34 = vshll.u32 %v96_v21, 16  ;;  %v101_v40 = vshrl.u32 %v96_v21, 16 }
  0x92   :  { %vm124_vm7 = vc.u32 %v116_v31, %v120_v38  ;;  %v126_v46 = vadd.s32 %v120_v38, %v116_v31  ;;  %v223_v62 = vshrl.u32 %v1169_v39, %v1272_v6  ;;  %v1307_v0 = vor.u32 %v217_v57, %v216_v54 }
  0x93   :  { %vm102_vm6 = vc.u32 %v94_v25, %v98_v29  ;;  %v104_v41 = vadd.s32 %v98_v29, %v94_v25  ;;  %v125_v50 = vsel %vm124_vm7, 1, %v1164_v2  ;;  %v225_v1 = vshll.u32 %v1169_v39, %v1251_v49 }
  0x94   :  { %v103_v44 = vsel %vm102_vm6, 1, %v1164_v2  ;;  %v127_v53 = vadd.s32 %v125_v50, %v119_v36  ;;  %vm128_vm9 = vc.u32 %v126_v46, %v122_v45  ;;  %v226_v3 = vshrl.u32 %v1170_v47, %v1272_v6 }
  0x95   :  { %v105_v48 = vadd.s32 %v103_v44, %v97_v26  ;;  %vm106_vm8 = vc.u32 %v104_v41, %v100_v34  ;;  %v129_v56 = vsel %vm128_vm9, 1, %v1164_v2  ;;  %v123_v4 = vshrl.u32 %v118_v23, 16 }
  0x96   :  { %v107_v52 = vsel %vm106_vm8, 1, %v1164_v2  ;;  %v131_v59 = vadd.s32 %v129_v56, %v127_v53  ;;  %v1313_v7 = vor.u32 %v220_v60, %v219_v58  ;;  %v224_v9 = vor.u32 %v223_v62, %v222_v61 }
  0x97   :  { %v109_v55 = vadd.s32 %v107_v52, %v105_v48  ;;  %v1317_v11 = vadd.s32 %v126_v46, %v122_v45  ;;  %v227_v20 = vor.u32 %v226_v3, %v225_v1  ;;  %vm228_vm10 = vcmp.lt.s32.totalorder %v1277_v15, 1 }
  0x98   :  { %v132_v5 = vadd.s32 %v131_v59, %v121_v42  ;;  %v80_v21 = vsel %vm74_vm5, %v77_v17, %v79_v19  ;;  %vm231_vm11 = vcmp.lt.s32.totalorder %v1277_v15, 4  ;;  %v236_v49 = vsel %vm228_vm10, %v1291_v51, %v1307_v0 }
  0x99   :  { %v110_v63 = vadd.s32 %v109_v55, %v99_v33  ;;  %vm230_vm13 = vcmp.lt.s32.totalorder %v1277_v15, 3  ;;  %v237_v23 = vsel %vm231_vm11, %v224_v9, 920167782  ;;  %vm229_vm14 = vcmp.lt.s32.totalorder %v1277_v15, 2 }
  0x9a   :  { %v133_v22 = vadd.s32 %v132_v5, %v123_v4  ;;  %v238_v28 = vsel %vm230_vm13, %v1313_v7, %v237_v23  ;;  %v240_v17 = vsel %vm228_vm10, %v1307_v0, %v1313_v7  ;;  %v354_v19 = vand.u32 2139095040, %v1275_v14 }
  0x9b   :  { %v1315_v10 = vadd.s32 %v110_v63, %v101_v40  ;;  %v134_v8 = vmul.u32 %v1244_v43, %v80_v21  ;;  %v239_v25 = vsel %vm229_vm14, %v236_v49, %v238_v28  ;;  %v241_v26 = vsel %vm231_vm11, %v227_v20, 1326507024  ;;  %v1356_v63 = vpop.eup %1132 }
  0x9c   :  { %v137_v24 = vadd.s32 1, %v133_v22  ;;  %v242_v31 = vsel %vm230_vm13, %v224_v9, %v241_v26  ;;  %v245_v33 = vand.u32 65535, %v1279_v16  ;;  %v269_v34 = vand.u32 65535, %v239_v25 }
  0x9d   :  { %vm136_vm12 = vc.u32 %v1315_v10, %v1317_v11  ;;  %v243_v38 = vsel %vm229_vm14, %v240_v17, %v242_v31  ;;  %v246_v40 = vshrl.u32 %v1279_v16, 16  ;;  %v270_v43 = vshrl.u32 %v239_v25, 16 }
  0x9e   :  { %v138_v29 = vsel %vm136_vm12, %v137_v24, %v133_v22  ;;  %v247_v41 = vand.u32 65535, %v243_v38  ;;  %v248_v42 = vshrl.u32 %v243_v38, 16  ;;  %v355_v52 = vshrl.u32 %v354_v19, 23 }
  0x9f   :  { %v139_v36 = vadd.s32 %v138_v29, %v134_v8  ;;  %v272_v45 = vmul.u32 %v270_v43, %v245_v33  ;;  %v273_v46 = vmul.u32 %v269_v34, %v246_v40  ;;  %v271_v54 = vmul.u32 %v269_v34, %v245_v33 }
  0xa0   :  { %v250_v48 = vmul.u32 %v248_v42, %v245_v33  ;;  %v251_v50 = vmul.u32 %v247_v41, %v246_v40  ;;  %v249_v56 = vmul.u32 %v247_v41, %v245_v33  ;;  %v252_v57 = vmul.u32 %v248_v42, %v246_v40 }
  0xa1   :  { %v140_v44 = vadd.s32 536870912, %v139_v36  ;;  %v275_v55 = vshll.u32 %v272_v45, 16  ;;  %v274_v59 = vmul.u32 %v270_v43, %v246_v40  ;;  %v277_v62 = vshll.u32 %v273_v46, 16 }
  0xa2   :  { %v253_v58 = vshll.u32 %v250_v48, 16  ;;  %v255_v61 = vshll.u32 %v251_v50, 16  ;;  %v1107_v5 = vadd.s32 4294967169, %v355_v52  ;;  %v507_v23 = vmul.f32 %v1356_v63, %v1224_v13 }
  0xa3   :  { %v1353_v53 = vshrl.u32 %v140_v44, 30  ;;  %vm279_vm15 = vc.u32 %v271_v54, %v275_v55  ;;  %v281_v4 = vadd.s32 %v275_v55, %v271_v54  ;;  %v233_v24 = vsel %vm231_vm11, %v1313_v7, 2102212464 }
  0xa4   :  { %vm257_vm0 = vc.u32 %v249_v56, %v253_v58  ;;  %v259_v1 = vadd.s32 %v253_v58, %v249_v56  ;;  %v280_v3 = vsel %vm279_vm15, 1, %v1164_v2  ;;  %v361_v19 = vadd.s32 1, %v1107_v5 }
  0xa5   :  { %v142_v60 = vshll.u32 %v1353_v53, 30  ;;  %v258_v20 = vsel %vm257_vm0, 1, %v1164_v2  ;;  %v282_v22 = vadd.s32 %v280_v3, %v274_v59  ;;  %vm283_vm2 = vc.u32 %v281_v4, %v277_v62 }
  0xa6   :  { %v260_v21 = vadd.s32 %v258_v20, %v252_v57  ;;  %vm261_vm1 = vc.u32 %v259_v1, %v255_v61  ;;  %v284_v17 = vsel %vm283_vm2, 1, %v1164_v2  ;;  %v212_v25 = vshrl.u32 %v1165_v30, %v1272_v6 }
  0xa7   :  { %v143_v9 = vsub.s32 %v139_v36, %v142_v60  ;;  %v262_v28 = vsel %vm261_vm1, 1, %v1164_v2  ;;  %v276_v26 = vshrl.u32 %v272_v45, 16  ;;  %v254_v31 = vshrl.u32 %v250_v48, 16 }
  0xa8   :  { %v264_v33 = vadd.s32 %v262_v28, %v260_v21  ;;  %v286_v34 = vadd.s32 %v284_v17, %v282_v22  ;;  %v508_v36 = vsub.f32 1.0, %v507_v23  ;;  %v232_v38 = vsel %vm228_vm10, %v212_v25, %v1291_v51 }
  0xa9   :  { %vm144_vm3 = vcmp.lt.s32.totalorder %v143_v9, 0  ;;  %v145_v49 = vsub.s32 0, %v143_v9  ;;  %v234_v7 = vsel %vm230_vm13, %v1307_v0, %v233_v24  ;;  %v256_v40 = vshrl.u32 %v251_v50, 16 }
  0xaa   :  { %v265_v41 = vadd.s32 %v264_v33, %v254_v31  ;;  %v278_v42 = vshrl.u32 %v273_v46, 16  ;;  %v287_v44 = vadd.s32 %v286_v34, %v276_v26  ;;  %vm362_vm4 = vcmp.gt.s32.totalorder %v361_v19, 0 }
  0xab   :  { %v146_v8 = vsel %vm144_vm3, %v145_v49, %v143_v9  ;;  %v551_v6 = vlaneseq  ;;  %vm43_vm5 = vcmp.lt.s32.totalorder %v1224_v13, 0  ;;  %v235_v45 = vsel %vm229_vm14, %v232_v38, %v234_v7 }
  0xac   :  { %v147_v29 = vclz %v146_v8  ;;  %v1379_v51 = vadd.s32 %v265_v41, %v256_v40  ;;  %v288_v48 = vadd.s32 %v287_v44, %v278_v42  ;;  %v165_v0 = vsub.s32 4, %v1353_v53 }
  0xad   :  { %vm184_vm7 = vweird.f32 %v1224_v13  ;;  %v509_v46 = vmul.f32 %v1356_v63, %v508_v36  ;;  %v1384_v50 = vadd.s32 %v281_v4, %v277_v62  ;;  %v135_v54 = vadd.s32 %v1317_v11, %v1315_v10  ;;  %v1395_v10 = vpop.eup %1134 }
  0xae   :  { %v1102_v43 = vadd.s32 4294967294, %v147_v29  ;;  %v517_v15 = vand.u32 2147483648, %v1224_v13  ;;  %vm512_vm8 = vweird.f32 %v1356_v63  ;;  %v289_v57 = vmul.u32 %v1279_v16, %v235_v45 }
  0xaf   :  { %vm291_vm9 = vc.u32 %v1379_v51, %v1384_v50  ;;  %v292_v58 = vadd.s32 1, %v288_v48  ;;  %vm42_vm10 = vcmp.le.f32.partialorder %v1229_v18, 0.7853982  ;;  %v363_v62 = vsel %vm362_vm4, %v361_v19, 0  ;;  %vm1424_vm11 = vmor %vm184_vm7, %vm512_vm8 }
  0xb0   :  { %vm1103_vm6 = vcmp.lt.s32.totalorder %v1102_v43, 0  ;;  %v166_v11 = vsel %vm43_vm5, %v165_v0, %v1353_v53  ;;  %v1401_v1 = vadd.f32 %v1356_v63, %v509_v46  ;;  %v365_v3 = vand.u32 31, %v363_v62 }
  0xb1   :  { %v150_v52 = vsel %vm1103_vm6, 0, %v1102_v43  ;;  %v293_v16 = vsel %vm291_vm9, %v292_v58, %v288_v48  ;;  %v1406_v21 = vshrl.u32 %v363_v62, 5  ;;  %vm516_vm1 = vcmp.eq.f32.partialorder %v1229_v18, 8.507059e+37 }
  0xb2   :  { %v151_v55 = vsub.s32 32, %v150_v52  ;;  %v155_v56 = vsub.s32 4294967266, %v150_v52  ;;  %v152_v59 = vshll.u32 %v143_v9, %v150_v52  ;;  %v294_v20 = vadd.s32 %v293_v16, %v289_v57 }
  0xb3   :  { %v1404_v9 = vand.u32 2147483647, %v1275_v14  ;;  %v366_v22 = vsub.s32 32, %v365_v3  ;;  %v368_v49 = vshll.u32 %v1165_v30, %v365_v3  ;;  %v371_v23 = vshll.u32 %v1166_v32, %v365_v3 }
  0xb4   :  { %v153_v60 = vshrl.u32 %v135_v54, %v151_v55  ;;  %v156_v61 = vadd.s32 127, %v155_v56  ;;  %v295_v28 = vadd.s32 536870912, %v294_v20  ;;  %v374_v17 = vshll.u32 %v1167_v35, %v365_v3 }
  0xb5   :  { %v369_v19 = vshrl.u32 %v1166_v32, %v366_v22  ;;  %v372_v8 = vshrl.u32 %v1167_v35, %v366_v22  ;;  %v375_v25 = vshrl.u32 %v1168_v37, %v366_v22  ;;  %v377_v26 = vshll.u32 %v1168_v37, %v365_v3 }
  0xb6   :  { %v154_v4 = vor.u32 %v153_v60, %v152_v59  ;;  %v157_v5 = vshll.u32 %v156_v61, 23  ;;  %v1415_v31 = vshrl.u32 %v295_v28, 30  ;;  %v378_v33 = vshrl.u32 %v1169_v39, %v366_v22 }
  0xb7   :  { %v380_v34 = vshll.u32 %v1169_v39, %v365_v3  ;;  %v370_v36 = vor.u32 %v369_v19, %v368_v49  ;;  %v373_v38 = vor.u32 %v372_v8, %v371_v23  ;;  %v376_v7 = vor.u32 %v375_v25, %v374_v17 }
  0xb8   :  { %v158_v24 = vor.u32 4788187, %v157_v5  ;;  %v161_v53 = vcvt.s32.f32 %v154_v4  ;;  %v381_v40 = vshrl.u32 %v1170_v47, %v366_v22  ;;  %v518_v35 = vor.u32 1.1754944e-38, %v517_v15 }
  0xb9   :  { %v297_v37 = vshll.u32 %v1415_v31, 30  ;;  %v379_v41 = vor.u32 %v378_v33, %v377_v26  ;;  %v168_v39 = vsel %vm42_vm10, 0, %v166_v11  ;;  %v514_v47 = vsel %vm1424_vm11, %v1356_v63, %v1401_v1 }
  0xba   :  { %v159_v29 = vand.u32 2147483647, %v158_v24  ;;  %v367_v42 = vshrl.u32 %v1165_v30, %v366_v22  ;;  %v382_v44 = vor.u32 %v381_v40, %v380_v34  ;;  %vm383_vm12 = vcmp.lt.s32.totalorder %v1406_v21, 1 }
  0xbb   :  { %v1436_v48 = vsub.s32 %v294_v20, %v297_v37  ;;  %vm386_vm13 = vcmp.lt.s32.totalorder %v1406_v21, 4  ;;  %v358_v52 = vand.u32 8388607, %v1404_v9  ;;  %v391_v63 = vsel %vm383_vm12, %v370_v36, %v373_v38 }
  0xbc   :  { %v162_v43 = vmul.f32 %v161_v53, %v159_v29  ;;  %v387_v0 = vsel %vm383_vm12, %v367_v42, %v370_v36  ;;  %v388_v46 = vsel %vm386_vm13, %v376_v7, 2102212464  ;;  %vm385_vm15 = vcmp.lt.s32.totalorder %v1406_v21, 3 }
  0xbd   :  { %vm299_vm14 = vcmp.lt.s32.totalorder %v1436_v48, 0  ;;  %v300_v54 = vsub.s32 0, %v1436_v48  ;;  %v185_v56 = vadd.s32 3, %v168_v39  ;;  %vm384_vm0 = vcmp.lt.s32.totalorder %v1406_v21, 2 }
  0xbe   :  { %v163_v45 = vxor.u32 2147483648, %v162_v43  ;;  %v389_v15 = vsel %vm385_vm15, %v373_v38, %v388_v46  ;;  %v1468_v60 = vshrl.u32 %v551_v6, 7  ;;  %v359_v62 = vor.u32 8388608, %v358_v52 }
  0xbf   :  { %v301_v58 = vsel %vm299_vm14, %v300_v54, %v1436_v48  ;;  %v1465_v59 = vsel %vm384_vm0, %v387_v0, %v389_v15  ;;  %v1471_v16 = vsel %vm516_vm1, %v518_v35, %v514_v47  ;;  %v395_v3 = vsel %vm383_vm12, %v373_v38, %v376_v7 }
  0xc0   :  { %v164_v30 = vsel %vm43_vm5, %v163_v45, %v162_v43  ;;  %v302_v61 = vclz %v301_v58  ;;  %v1475_v4 = vand.u32 3, %v185_v56  ;;  %v1477_v5 = vand.u32 3, %v168_v39 }
  0xc1   :  { %v1455_v55 = vsel %vm42_vm10, %v1224_v13, %v164_v30  ;;  %v1481_v6 = vmul.f32 %v1395_v10, %v1221_v12  ;;  %vm198_vm2 = vcmp.lt.s32.totalorder %v1221_v12, 0  ;;  %v290_v49 = vadd.s32 %v1384_v50, %v1379_v51 }
  0xc2   :  { %v169_v57 = vmul.f32 %v1455_v55, %v1455_v55  ;;  %v1105_v20 = vadd.s32 4294967294, %v302_v61  ;;  %v392_v23 = vsel %vm386_vm13, %v379_v41, 920167782  ;;  %v396_v53 = vsel %vm386_vm13, %v382_v44, 1326507024 }
  0xc3   :  { %v393_v24 = vsel %vm385_vm15, %v376_v7, %v392_v23  ;;  %v1492_v28 = vshll.u32 %v359_v62, 8  ;;  %v320_v26 = vsub.s32 4, %v1415_v31  ;;  %v397_v29 = vsel %vm385_vm15, %v379_v41, %v396_v53 }
  0xc4   :  { %v170_v11 = vmul.f32 -0.001358992, %v169_v57  ;;  %v177_v1 = vmul.f32 -0.00019511016, %v169_v57  ;;  %vm1106_vm3 = vcmp.lt.s32.totalorder %v1105_v20, 0  ;;  %v1496_v25 = vsel %vm384_vm0, %v391_v63, %v393_v24 }
  0xc5   :  { %v305_v8 = vsel %vm1106_vm3, 0, %v1105_v20  ;;  %v398_v38 = vsel %vm384_vm0, %v395_v3, %v397_v29  ;;  %vm188_vm4 = vcmp.eq.s32.totalorder %v1475_v4, 0  ;;  %vm704_vm5 = vcmp.eq.s32.totalorder %v1477_v5, 0 }
  0xc6   :  { %v171_v22 = vadd.f32 0.041655596, %v170_v11  ;;  %v178_v18 = vadd.f32 0.008332121, %v177_v1  ;;  %v306_v51 = vsub.s32 32, %v305_v8  ;;  %v310_v50 = vsub.s32 4294967266, %v305_v8 }
  0xc7   :  { %v307_v36 = vshll.u32 %v1436_v48, %v305_v8  ;;  %vm707_vm6 = vcmp.eq.s32.totalorder %v1477_v5, 2  ;;  %v401_v43 = vshrl.u32 %v1492_v28, 16  ;;  %v402_v32 = vand.u32 65535, %v398_v38 }
  0xc8   :  { %v172_v17 = vmul.f32 %v171_v22, %v169_v57  ;;  %v179_v19 = vmul.f32 %v178_v18, %v169_v57  ;;  %v308_v7 = vshrl.u32 %v290_v49, %v306_v51  ;;  %v311_v40 = vadd.s32 127, %v310_v50 }
  0xc9   :  { %vm187_vm8 = vcmp.lt.s32.totalorder %v1475_v4, 2  ;;  %vm703_vm9 = vcmp.lt.s32.totalorder %v1477_v5, 2  ;;  %v400_v21 = vand.u32 65535, %v1492_v28  ;;  %v403_v41 = vshrl.u32 %v398_v38, 16 }
  0xca   :  { %v173_v33 = vadd.f32 -0.4999988, %v172_v17  ;;  %v180_v34 = vadd.f32 -0.16666654, %v179_v19  ;;  %vm191_vm10 = vcmp.eq.s32.totalorder %v1475_v4, 2  ;;  %v309_v39 = vor.u32 %v308_v7, %v307_v36 }
  0xcb   :  { %v312_v47 = vshll.u32 %v311_v40, 23  ;;  %v406_v42 = vmul.u32 %v402_v32, %v401_v43  ;;  %v405_v48 = vmul.u32 %v403_v41, %v400_v21  ;;  %v424_v52 = vand.u32 65535, %v1496_v25 }
  0xcc   :  { %v174_v35 = vmul.f32 %v173_v33, %v169_v57  ;;  %v181_v37 = vmul.f32 %v180_v34, %v169_v57  ;;  %vm197_vm11 = vcmp.le.f32.partialorder %v1233_v27, 0.7853982  ;;  %v321_v46 = vsel %vm198_vm2, %v320_v26, %v1415_v31 }
  0xcd   :  { %v313_v0 = vor.u32 4788187, %v312_v47  ;;  %v404_v63 = vmul.u32 %v402_v32, %v400_v21  ;;  %v407_v30 = vmul.u32 %v403_v41, %v401_v43  ;;  %v316_v15 = vcvt.s32.f32 %v309_v39 }
  0xce   :  { %v175_v44 = vadd.f32 1.0, %v174_v35  ;;  %v182_v45 = vadd.f32 1.0, %v181_v37  ;;  %v408_v57 = vshll.u32 %v405_v48, 16  ;;  %v410_v61 = vshll.u32 %v406_v42, 16 }
  0xcf   :  { %v314_v58 = vand.u32 2147483647, %v313_v0  ;;  %v411_v62 = vshrl.u32 %v406_v42, 16  ;;  %v425_v11 = vshrl.u32 %v1496_v25, 16  ;;  %vm1026_vm12 = vcmp.ge.s32.totalorder %v1468_v60, 6 }
  0xd0   :  { %v183_v54 = vmul.f32 %v182_v45, %v1455_v55  ;;  %v192_v56 = vxor.u32 2147483648, %v175_v44  ;;  %vm412_vm13 = vc.u32 %v404_v63, %v408_v57  ;;  %v426_v31 = vmul.u32 %v424_v52, %v400_v21 }
  0xd1   :  { %v317_v20 = vmul.f32 %v316_v15, %v314_v58  ;;  %v413_v22 = vsel %vm412_vm13, 1, %v1164_v2  ;;  %v414_v55 = vadd.s32 %v408_v57, %v404_v63  ;;  %v427_v18 = vmul.u32 %v425_v11, %v400_v21 }
  0xd2   :  { %v189_v1 = vxor.u32 2147483648, %v183_v54  ;;  %v193_v3 = vsel %vm191_vm10, %v192_v56, %v183_v54  ;;  %v709_v24 = vsel %vm707_vm6, %v192_v56, %v183_v54  ;;  %v415_v53 = vadd.s32 %v413_v22, %v407_v30 }
  0xd3   :  { %v318_v8 = vxor.u32 2147483648, %v317_v20  ;;  %vm416_vm14 = vc.u32 %v414_v55, %v410_v61  ;;  %v428_v50 = vmul.u32 %v424_v52, %v401_v43  ;;  %v430_v26 = vshll.u32 %v427_v18, 16  ;;  %v1065_v52 = vpop.permute.xlu1 %1064 }
  0xd4   :  { %v190_v49 = vsel %vm188_vm4, %v175_v44, %v189_v1  ;;  %v706_v23 = vsel %vm704_vm5, %v175_v44, %v189_v1  ;;  %v417_v51 = vsel %vm416_vm14, 1, %v1164_v2  ;;  %v409_v34 = vshrl.u32 %v405_v48, 16 }
  0xd5   :  { %v194_v17 = vsel %vm187_vm8, %v190_v49, %v193_v3  ;;  %v710_v19 = vsel %vm703_vm9, %v706_v23, %v709_v24  ;;  %v319_v33 = vsel %vm198_vm2, %v318_v8, %v317_v20  ;;  %v419_v4 = vadd.s32 %v417_v51, %v415_v53 }
  0xd6   :  { %v195_v25 = vsel %vm184_vm7, nan, %v194_v17  ;;  %v711_v5 = vsel %vm184_vm7, nan, %v710_v19  ;;  %v322_v36 = vsel %vm197_vm11, %v1221_v12, %v319_v33  ;;  %v429_v38 = vmul.u32 %v425_v11, %v401_v43 }
  0xd7   :  { %v555_v29 = vmul.f32 %v1471_v16, %v195_v25  ;;  %vm434_vm15 = vc.u32 %v426_v31, %v430_v26  ;;  %v324_v40 = vmul.f32 %v322_v36, %v322_v36  ;;  %v420_v32 = vadd.s32 %v419_v4, %v409_v34 }
  0xd8   :  { %v435_v35 = vsel %vm434_vm15, 1, %v1164_v2  ;;  %v523_v37 = vsub.f32 1.0, %v1481_v6  ;;  %v432_v21 = vshll.u32 %v428_v50, 16  ;;  %v436_v41 = vadd.s32 %v430_v26, %v426_v31 }
  0xd9   :  { %v1020_v7 = vsub.f32 %v555_v29, %v711_v5  ;;  %v437_v39 = vadd.s32 %v435_v35, %v429_v38  ;;  %v325_v13 = vmul.f32 -0.001358992, %v324_v40  ;;  %v332_v42 = vmul.f32 -0.00019511016, %v324_v40 }
  0xda   :  { %v421_v44 = vadd.s32 %v420_v32, %v411_v62  ;;  %v323_v45 = vsel %vm197_vm11, 0, %v321_v46  ;;  %v431_v43 = vshrl.u32 %v427_v18, 16  ;;  %vm438_vm7 = vc.u32 %v436_v41, %v432_v21 }
  0xdb   :  { %v1023_v47 = vmul.f32 %v1020_v7, %v1471_v16  ;;  %v440_v48 = vadd.s32 %v436_v41, %v432_v21  ;;  %v326_v63 = vadd.f32 0.041655596, %v325_v13  ;;  %v333_v6 = vadd.f32 0.008332121, %v332_v42 }
  0xdc   :  { %v439_v30 = vsel %vm438_vm7, 1, %v1164_v2  ;;  %v524_v46 = vmul.f32 %v1395_v10, %v523_v37  ;;  %v433_v58 = vshrl.u32 %v428_v50, 16  ;;  %v340_v1 = vadd.s32 3, %v323_v45 }
  0xdd   :  { %v1035_v0 = vsel %vm1026_vm12, %v1023_v47, %v555_v29  ;;  %v441_v56 = vadd.s32 %v439_v30, %v437_v39  ;;  %v1552_v16 = vadd.s32 %v440_v48, %v421_v44  ;;  %vm446_vm0 = vc.u32 %v421_v44, %v440_v48  ;;  %v1070_v48 = vpop.permute.xlu2 %1069 }
  0xde   :  { %v1077_v54 = vmul.f32 %v1065_v52, %v1035_v0  ;;  %v327_v15 = vmul.f32 %v326_v63, %v324_v40  ;;  %v334_v57 = vmul.f32 %v333_v6, %v324_v40  ;;  %vm527_vm1 = vweird.f32 %v1395_v10 }
  0xdf   :  { %v442_v61 = vadd.s32 %v441_v56, %v431_v43  ;;  %v525_v2 = vadd.f32 %v1395_v10, %v524_v46  ;;  %v532_v22 = vand.u32 2147483648, %v1221_v12  ;;  %v856_v55 = vand.u32 3, %v323_v45 }
  0xe0   :  { %1080 = vst [vmem:[#allocation2] sm:$0xff] %v1077_v54  ;;  %v328_v62 = vadd.f32 -0.4999988, %v327_v15  ;;  %v335_v11 = vadd.f32 -0.16666654, %v334_v57  ;;  %v341_v24 = vand.u32 3, %v340_v1  ;;  %v444_v53 = vmul.u32 %v1492_v28, %v1465_v59  ;;  %v1137_v1 = vpop.eup %1136 }
  0xe1   :  { %v443_v3 = vadd.s32 %v442_v61, %v433_v58  ;;  %vm339_vm2 = vweird.f32 %v1221_v12  ;;  %v533_v26 = vor.u32 1.1754944e-38, %v532_v22  ;;  %vm857_vm4 = vcmp.lt.s32.totalorder %v856_v55, 2 }
  0xe2   :  { %v329_v31 = vmul.f32 %v328_v62, %v324_v40  ;;  %v336_v20 = vmul.f32 %v335_v11, %v324_v40  ;;  %vm1564_vm3 = vmor %vm339_vm2, %vm527_vm1  ;;  %vm346_vm5 = vcmp.eq.s32.totalorder %v341_v24, 2  ;;  %vm858_vm6 = vcmp.eq.s32.totalorder %v856_v55, 0 }
  0xe3   :  { %v447_v18 = vadd.s32 1, %v443_v3  ;;  %v529_v50 = vsel %vm1564_vm3, %v1395_v10, %v525_v2  ;;  %vm342_vm8 = vcmp.lt.s32.totalorder %v341_v24, 2  ;;  %vm343_vm9 = vcmp.eq.s32.totalorder %v341_v24, 0 }
  0xe4   :  { %v330_v49 = vadd.f32 1.0, %v329_v31  ;;  %v337_v23 = vadd.f32 1.0, %v336_v20  ;;  %vm861_vm10 = vcmp.eq.s32.totalorder %v856_v55, 2  ;;  %vm531_vm11 = vcmp.eq.f32.partialorder %v1233_v27, 8.507059e+37 }
  0xe5   :  { %v448_v17 = vsel %vm446_vm0, %v447_v18, %v443_v3  ;;  %v534_v7 = vsel %vm531_vm11, %v533_v26, %v529_v50  ;;  %v553_v41 = vadd.s32 8, %v1468_v60  ;;  %vm353_vm15 = vcmp.lt.s32.totalorder %v1275_v14, 0 }
  0xe6   :  { %v338_v19 = vmul.f32 %v337_v23, %v322_v36  ;;  %v347_v8 = vxor.u32 2147483648, %v330_v49  ;;  %v449_v51 = vadd.s32 %v448_v17, %v444_v53  ;;  %v1039_v13 = vmul.f32 3.0, %v534_v7 }
  0xe7   :  { %vm1048_vm13 = vcmp.ge.s32.totalorder %v553_v41, 12  ;;  %vm352_vm7 = vcmp.le.f32.partialorder %v1404_v9, 0.7853982  ;;  %v537_v2 = vmul.f32 %v1137_v1, %v1275_v14  ;;  %vm542_vm0 = vweird.f32 %v1137_v1 }
  0xe8   :  { %v344_v59 = vxor.u32 2147483648, %v338_v19  ;;  %v450_v28 = vadd.s32 536870912, %v449_v51  ;;  %v348_v29 = vsel %vm346_vm5, %v347_v8, %v338_v19  ;;  %v863_v4 = vsel %vm861_vm10, %v347_v8, %v338_v19 }
  0xe9   :  { %v538_v24 = vsub.f32 1.0, %v537_v2  ;;  %vm494_vm1 = vweird.f32 %v1275_v14  ;;  %vm546_vm10 = vcmp.eq.f32.partialorder %v1404_v9, 8.507059e+37 }
  0xea   :  { %v345_v33 = vsel %vm343_vm9, %v330_v49, %v344_v59  ;;  %v860_v34 = vsel %vm858_vm6, %v330_v49, %v344_v59  ;;  %v451_v5 = vshrl.u32 %v450_v28, 30 }
  0xeb   :  { %v349_v36 = vsel %vm342_vm8, %v345_v33, %v348_v29  ;;  %v864_v38 = vsel %vm857_vm4, %v860_v34, %v863_v4  ;;  %v547_v4 = vand.u32 2147483648, %v1275_v14  ;;  %vm543_vm4 = vmor %vm494_vm1, %vm542_vm0 }
  0xec   :  { %v350_v10 = vsel %vm339_vm2, nan, %v349_v36  ;;  %v452_v40 = vshll.u32 %v451_v5, 30  ;;  %v865_v35 = vsel %vm339_vm2, nan, %v864_v38  ;;  %v475_v11 = vsub.s32 4, %v451_v5 }
  0xed   :  { %v556_v32 = vmul.f32 %v534_v7, %v350_v10 }
  0xee   :  { %v453_v37 = vsub.s32 %v449_v51, %v452_v40  ;;  %v476_v20 = vsel %vm353_vm15, %v475_v11, %v451_v5  ;;  %v539_v51 = vmul.f32 %v1137_v1, %v538_v24 }
  0xef   :  { %v1021_v21 = vsub.f32 %v556_v32, %v865_v35  ;;  %v478_v18 = vsel %vm352_vm7, 0, %v476_v20 }
  0xf0   :  { %vm454_vm12 = vcmp.lt.s32.totalorder %v453_v37, 0  ;;  %v455_v39 = vsub.s32 0, %v453_v37  ;;  %v495_v19 = vadd.s32 3, %v478_v18  ;;  %v1010_v28 = vand.u32 3, %v478_v18 }
  0xf1   :  { %v1024_v47 = vmul.f32 %v1021_v21, %v534_v7  ;;  %v540_v34 = vadd.f32 %v1137_v1, %v539_v51 }
  0xf2   :  { %v456_v42 = vsel %vm454_vm12, %v455_v39, %v453_v37  ;;  %v496_v59 = vand.u32 3, %v495_v19  ;;  %vm1015_vm3 = vcmp.eq.s32.totalorder %v1010_v28, 2  ;;  %vm1012_vm6 = vcmp.eq.s32.totalorder %v1010_v28, 0 }
  0xf3   :  { %v1042_v27 = vmul.f32 %v1039_v13, %v1024_v47  ;;  %v457_v44 = vclz %v456_v42  ;;  %v544_v40 = vsel %vm543_vm4, %v1137_v1, %v540_v34  ;;  %vm1011_vm9 = vcmp.lt.s32.totalorder %v1010_v28, 2 }
  0xf4   :  { %vm501_vm2 = vcmp.eq.s32.totalorder %v496_v59, 2  ;;  %vm498_vm5 = vcmp.eq.s32.totalorder %v496_v59, 0  ;;  %vm497_vm8 = vcmp.lt.s32.totalorder %v496_v59, 2 }
  0xf5   :  { %v1045_v45 = vsub.f32 %v1042_v27, %v556_v32  ;;  %v1108_v43 = vadd.s32 4294967294, %v457_v44  ;;  %v548_v32 = vor.u32 1.1754944e-38, %v547_v4 }
  0xf7   :  { %v1057_v52 = vsel %vm1048_vm13, %v1045_v45, %v1024_v47  ;;  %vm1109_vm14 = vcmp.lt.s32.totalorder %v1108_v43, 0  ;;  %v549_v47 = vsel %vm546_vm10, %v548_v32, %v544_v40 }
  0xf8   :  { %v1078_v0 = vmul.f32 %v1070_v48, %v1057_v52  ;;  %v460_v12 = vsel %vm1109_vm14, 0, %v1108_v43  ;;  %v1040_v45 = vmul.f32 3.0, %v549_v47  ;;  %v1075_v48 = vpop.permute.xlu2 %1074 }
  0xf9   :  { %v461_v63 = vsub.s32 32, %v460_v12  ;;  %v465_v6 = vsub.s32 4294967266, %v460_v12  ;;  %v462_v30 = vshll.u32 %v453_v37, %v460_v12 }
  0xfa   :  { %1081 = vst [vmem:[#allocation2 + $0x8] sm:$0xff] %v1078_v0 }
  0xfb   :  { %v463_v60 = vshrl.u32 %v1552_v16, %v461_v63  ;;  %v466_v54 = vadd.s32 127, %v465_v6 }
  0xfd   :  { %v464_v56 = vor.u32 %v463_v60, %v462_v30  ;;  %v467_v15 = vshll.u32 %v466_v54, 23 }
  0xff   :  { %v468_v57 = vor.u32 4788187, %v467_v15  ;;  %v471_v58 = vcvt.s32.f32 %v464_v56 }
 0x101   :  { %v469_v46 = vand.u32 2147483647, %v468_v57 }
 0x103   :  { %v472_v61 = vmul.f32 %v471_v58, %v469_v46 }
 0x105   :  { %v473_v62 = vxor.u32 2147483648, %v472_v61 }
 0x107   :  { %v474_v3 = vsel %vm353_vm15, %v473_v62, %v472_v61 }
 0x108   :  { %v477_v31 = vsel %vm352_vm7, %v1275_v14, %v474_v3 }
 0x109   :  { %v479_v16 = vmul.f32 %v477_v31, %v477_v31 }
 0x10b   :  { %v480_v22 = vmul.f32 -0.001358992, %v479_v16  ;;  %v487_v55 = vmul.f32 -0.00019511016, %v479_v16 }
 0x10d   :  { %v481_v49 = vadd.f32 0.041655596, %v480_v22  ;;  %v488_v23 = vadd.f32 0.008332121, %v487_v55 }
 0x10f   :  { %v482_v53 = vmul.f32 %v481_v49, %v479_v16  ;;  %v489_v17 = vmul.f32 %v488_v23, %v479_v16 }
 0x111   :  { %v483_v8 = vadd.f32 -0.4999988, %v482_v53  ;;  %v490_v25 = vadd.f32 -0.16666654, %v489_v17 }
 0x113   :  { %v484_v50 = vmul.f32 %v483_v8, %v479_v16  ;;  %v491_v26 = vmul.f32 %v490_v25, %v479_v16 }
 0x115   :  { %v485_v29 = vadd.f32 1.0, %v484_v50  ;;  %v492_v33 = vadd.f32 1.0, %v491_v26 }
 0x117   :  { %v493_v5 = vmul.f32 %v492_v33, %v477_v31  ;;  %v502_v36 = vxor.u32 2147483648, %v485_v29 }
 0x119   :  { %v499_v38 = vxor.u32 2147483648, %v493_v5  ;;  %v503_v10 = vsel %vm501_vm2, %v502_v36, %v493_v5  ;;  %v1017_v7 = vsel %vm1015_vm3, %v502_v36, %v493_v5 }
 0x11b   :  { %v500_v35 = vsel %vm498_vm5, %v485_v29, %v499_v38  ;;  %v1014_v37 = vsel %vm1012_vm6, %v485_v29, %v499_v38 }
 0x11c   :  { %v504_v21 = vsel %vm497_vm8, %v500_v35, %v503_v10  ;;  %v1018_v41 = vsel %vm1011_vm9, %v1014_v37, %v1017_v7 }
 0x11d   :  { %v505_v39 = vsel %vm494_vm1, nan, %v504_v21  ;;  %v1019_v42 = vsel %vm494_vm1, nan, %v1018_v41 }
 0x11e   :  { %v557_v13 = vmul.f32 %v549_v47, %v505_v39 }
 0x120   :  { %v1022_v27 = vsub.f32 %v557_v13, %v1019_v42 }
 0x122   :  { %v1025_v44 = vmul.f32 %v1022_v27, %v549_v47 }
 0x124   :  { %v1043_v43 = vmul.f32 %v1040_v45, %v1025_v44 }
 0x126   :  { %v1046_v9 = vsub.f32 %v1043_v43, %v557_v13 }
 0x128   :  { %v1079_v52 = vmul.f32 %v1075_v48, %v1046_v9 }
 0x12a   :  { %1082 = vst [vmem:[#allocation2 + $0x10] sm:$0x3] %v1079_v52 }
 0x12b   :  { %1095 = dma.vmem_to_hbm [thread:$0]  %s1088_s2, 384, %s1090_s27, [#allocation3], %s1172_s28, %s1172_s28, %s1173_s29  }
 0x12c   :  { %1162 = dma.done.wait [#allocation3], 384  }
 0x12d   :  { %1163 = vsyncadd [#allocation3], 4294966912 }
 0x12e   :  { %1100 = vsyncpa [#allocation3], 1 }

</bundles_post_ra>
